<compile_context>
chip_gen: v5e
topology: v5e:2x2
jax: 0.10.0
libtpu: 0.0.40
codegen_flags: <defaults>
</compile_context>

<pallas_src>
import functools

import jax
import jax.numpy as jnp
from jax import lax
from jax.experimental import pallas as pl
from jax.experimental.pallas import tpu as pltpu


# ---------------------------------------------------------------------------
# Kernel
# ---------------------------------------------------------------------------
def _stc_encoder_kernel(self_ref, neigh_ref, w_self_ref, w_neigh_ref,
                        bias_ref, out_ref, *, mm_dtype):
    # BN is pre-folded into w_self / bias in the wrapper, so the tile body is
    # two MXU contractions (f32 accumulation), a bias add, and ReLU.
    acc = jnp.dot(self_ref[...].astype(mm_dtype), w_self_ref[...],
                  preferred_element_type=jnp.float32)                 # [TN, E]
    acc = acc + jnp.dot(neigh_ref[...].astype(mm_dtype), w_neigh_ref[...],
                        preferred_element_type=jnp.float32)           # [TN, E]
    # Lane-dense [TN, E] store (E on the lane axis).
    out_ref[...] = jnp.maximum(acc + bias_ref[...], 0.0)


# ---------------------------------------------------------------------------
# Tile sizing helpers (per-generation VMEM aware)
# ---------------------------------------------------------------------------
def _tpu_vmem_capacity_bytes():
    try:
        return int(pltpu.get_tpu_info().vmem_capacity_bytes)
    except Exception:
        return 64 * 1024 * 1024  # conservative (v7x per-TC)


def _pick_tile_n(n, f, e):
    cap = _tpu_vmem_capacity_bytes()
    budget = cap // 4                              # headroom under scoped VMEM
    per_row = 4 * (2 * (f + f) + 2 * e)            # dbl-buffered self+neigh+out
    fixed = 4 * 2 * (2 * f * e + e)                # two [F,E] weights + bias
    tile = (budget - fixed) // per_row if budget > fixed else 64
    tile = int(min(max(tile, 8), 2048))
    tile = (tile // 8) * 8
    n_ceil8 = ((n + 7) // 8) * 8
    return max(8, min(tile, n_ceil8))


# ---------------------------------------------------------------------------
# Wrapper
# ---------------------------------------------------------------------------
def stc_encoder_forward(self_feats, neigh_feats, detaching_weight,
                        bn_gamma, bn_beta, *, eps=1e-5, tile_n=None,
                        use_bf16_matmul=False):
    """self_feats [N,F], neigh_feats [N,F], detaching_weight [E,2F],
    bn_gamma/bn_beta [F]. Returns [E, N] (PyTorch orientation)."""
    n, f = self_feats.shape
    e = detaching_weight.shape[0]
    assert neigh_feats.shape == (n, f)
    assert detaching_weight.shape == (e, 2 * f)

    x = self_feats.astype(jnp.float32)
    nb = neigh_feats.astype(jnp.float32)

    # --- BatchNorm1d training-mode batch stats (biased variance), computed
    #     once in the wrapper and folded into the weights so the kernel's N
    #     grid axis stays fully 'parallel' with no cross-tile reduction. ---
    mean = jnp.mean(x, axis=0, keepdims=True)                        # [1, F]
    var = jnp.mean(jnp.square(x - mean), axis=0, keepdims=True)      # [1, F]
    inv_std = lax.rsqrt(var + eps)
    scale = bn_gamma.reshape(1, f).astype(jnp.float32) * inv_std     # [1, F]
    shift = bn_beta.reshape(1, f).astype(jnp.float32) - mean * scale  # [1, F]

    # --- weight pre-transposed ONCE to [2F, E]; BN scale folded into the
    #     self half, BN shift folded into a per-output bias. ---
    mm_dtype = jnp.bfloat16 if use_bf16_matmul else jnp.float32
    w_t = detaching_weight.astype(jnp.float32).T                     # [2F, E]
    w_self = (scale.reshape(f, 1) * w_t[:f]).astype(mm_dtype)        # [F, E]
    w_neigh = w_t[f:].astype(mm_dtype)                               # [F, E]
    bias = (shift @ w_t[:f]).astype(jnp.float32)                     # [1, E]

    # --- grid over N (parallel); pad N to a multiple of the tile. Padded
    #     rows are sliced off after the call (BN stats use the unpadded x). ---
    if tile_n is None:
        tile_n = _pick_tile_n(n, f, e)
    tile_n = max(8, (int(tile_n) // 8) * 8)
    n_pad = ((n + tile_n - 1) // tile_n) * tile_n
    if n_pad != n:
        pad = ((0, n_pad - n), (0, 0))
        x = jnp.pad(x, pad)
        nb = jnp.pad(nb, pad)

    grid = (n_pad // tile_n,)
    kernel = functools.partial(_stc_encoder_kernel, mm_dtype=mm_dtype)

    out_ne = pl.pallas_call(
        kernel,
        out_shape=jax.ShapeDtypeStruct((n_pad, e), jnp.float32),
        grid_spec=pltpu.PrefetchScalarGridSpec(
            num_scalar_prefetch=0,
            grid=grid,
            in_specs=[
                pl.BlockSpec((tile_n, f), lambda i: (i, 0)),        # self
                pl.BlockSpec((tile_n, f), lambda i: (i, 0)),        # neigh
                pl.BlockSpec((f, e), lambda i: (0, 0)),             # scale*Ws^T
                pl.BlockSpec((f, e), lambda i: (0, 0)),             # Wn^T
                pl.BlockSpec((1, e), lambda i: (0, 0)),             # bias
            ],
            out_specs=pl.BlockSpec((tile_n, e), lambda i: (i, 0)),  # [N, E]
        ),
        compiler_params=pltpu.CompilerParams(
            dimension_semantics=("parallel",),
            vmem_limit_bytes=_tpu_vmem_capacity_bytes() // 2,
        ),
    )(x, nb, w_self, w_neigh, bias)

    # Lane-dense [N, E] inside the kernel; cheap final transpose in XLA to
    # match `detaching_weight.mm(combined.t())` -> [E, N].
    return out_ne[:n].T


# ---------------------------------------------------------------------------
# Pure-JAX reference (mirrors the PyTorch forward)
# ---------------------------------------------------------------------------
def _reference(self_feats, neigh_feats, w, gamma, beta, eps=1e-5):
    mean = jnp.mean(self_feats, axis=0, keepdims=True)
    var = jnp.mean((self_feats - mean) ** 2, axis=0, keepdims=True)
    sbn = (self_feats - mean) / jnp.sqrt(var + eps) * gamma + beta
    combined = jnp.concatenate([sbn, neigh_feats], axis=1)
    return jnp.maximum(w @ combined.T, 0.0)


if __name__ == "__main__":
    key = jax.random.PRNGKey(0)
    k_feat, k_neigh, k_w, k_g, k_b = jax.random.split(key, 5)

    # Small, module-consistent shapes.
    num_total_nodes = 40
    batch_nodes = 20         # N (len(nodes)); not a tile multiple -> tests padding
    feature_dim = 16         # F
    embedding_dim = 32       # E

    # Node feature table ("features" function) + batch node ids (glue gather).
    feature_table = jax.random.normal(
        k_feat, (num_total_nodes, feature_dim), dtype=jnp.float32)
    node_ids = jnp.arange(batch_nodes, dtype=jnp.int32)
    self_feats = jnp.take(feature_table, node_ids, axis=0)

    # Stand-in for STC_layer.forward(nodes, adjacent_list) output.
    neigh_feats = jax.random.normal(
        k_neigh, (batch_nodes, feature_dim), dtype=jnp.float32)

    # detaching_weight: xavier_uniform_((E, 2F)), deterministic.
    fan_in, fan_out = 2 * feature_dim, embedding_dim
    bound = float(jnp.sqrt(6.0 / (fan_in + fan_out)))
    detaching_weight = jax.random.uniform(
        k_w, (embedding_dim, 2 * feature_dim),
        minval=-bound, maxval=bound, dtype=jnp.float32)

    # PyTorch default init is gamma=1, beta=0; use non-trivial values here so
    # the affine path is actually exercised.
    bn_gamma = 1.0 + 0.1 * jax.random.normal(k_g, (feature_dim,), jnp.float32)
    bn_beta = 0.1 * jax.random.normal(k_b, (feature_dim,), jnp.float32)

    ref = _reference(self_feats, neigh_feats, detaching_weight,
                     bn_gamma, bn_beta)

    # 1) auto tile (single grid step at this size), f32 MXU path.
    out = stc_encoder_forward(self_feats, neigh_feats, detaching_weight,
                              bn_gamma, bn_beta)
    out = jax.block_until_ready(out)
    assert out.shape == (embedding_dim, batch_nodes)
    assert jnp.allclose(out, ref, atol=1e-4, rtol=1e-4)

    # 2) forced small tile -> multi-step 'parallel' grid over N with padding.
    out_tiled = stc_encoder_forward(self_feats, neigh_feats, detaching_weight,
                                    bn_gamma, bn_beta, tile_n=8)
    out_tiled = jax.block_until_ready(out_tiled)
    assert jnp.allclose(out_tiled, ref, atol=1e-4, rtol=1e-4)

    # 3) bf16 MXU operands (v6e/v7x fast path), f32 accumulation.
    out_bf16 = stc_encoder_forward(self_feats, neigh_feats, detaching_weight,
                                   bn_gamma, bn_beta, tile_n=8,
                                   use_bf16_matmul=True)
    out_bf16 = jax.block_until_ready(out_bf16)
    assert jnp.allclose(out_bf16, ref, atol=5e-2, rtol=5e-2)

    print("KERNEL_OK")
</pallas_src>

<mosaic_0001>
module attributes {stable_mosaic.version = 11 : i64} {
  func.func @_stc_encoder_kernel(%arg0: i32, %arg1: memref<24x16xf32, #tpu.memory_space<vmem>>, %arg2: memref<24x16xf32, #tpu.memory_space<vmem>>, %arg3: memref<16x32xf32, #tpu.memory_space<vmem>>, %arg4: memref<16x32xf32, #tpu.memory_space<vmem>>, %arg5: memref<1x32xf32, #tpu.memory_space<vmem>>, %arg6: memref<24x32xf32, #tpu.memory_space<vmem>>) attributes {dimension_semantics = [#tpu.dimension_semantics<parallel>], iteration_bounds = array<i64: 1>, scalar_prefetch = 0 : i64, scratch_operands = 0 : i64, tpu.core_type = #tpu.core_type<tc>, window_params = [{transform_indices = @transform_0, window_bounds = array<i64: 24, 16>}, {transform_indices = @transform_1, window_bounds = array<i64: 24, 16>}, {pipeline_mode = #tpu.pipeline_mode<synchronous>, transform_indices = @transform_2, window_bounds = array<i64: 16, 32>}, {pipeline_mode = #tpu.pipeline_mode<synchronous>, transform_indices = @transform_3, window_bounds = array<i64: 16, 32>}, {pipeline_mode = #tpu.pipeline_mode<synchronous>, transform_indices = @transform_4, window_bounds = array<i64: 1, 32>}, {transform_indices = @transform_5, window_bounds = array<i64: 24, 32>}]} {
    %c0 = arith.constant 0 : index
    %c0_0 = arith.constant 0 : index
    %0 = vector.load %arg1[%c0, %c0_0] : memref<24x16xf32, #tpu.memory_space<vmem>>, vector<24x16xf32>
    %c0_1 = arith.constant 0 : index
    %c0_2 = arith.constant 0 : index
    %1 = vector.load %arg3[%c0_1, %c0_2] : memref<16x32xf32, #tpu.memory_space<vmem>>, vector<16x32xf32>
    %cst = arith.constant dense<0.000000e+00> : vector<24x32xf32>
    %2 = tpu.matmul %0, %1, %cst {dimension_numbers = #tpu.dot_dimension_numbers<[1], [0], [0], [1], [0, 0, 1, 1], [], []>} : vector<24x16xf32>, vector<16x32xf32>, vector<24x32xf32> -> vector<24x32xf32>
    %c0_3 = arith.constant 0 : index
    %c0_4 = arith.constant 0 : index
    %3 = vector.load %arg2[%c0_3, %c0_4] : memref<24x16xf32, #tpu.memory_space<vmem>>, vector<24x16xf32>
    %c0_5 = arith.constant 0 : index
    %c0_6 = arith.constant 0 : index
    %4 = vector.load %arg4[%c0_5, %c0_6] : memref<16x32xf32, #tpu.memory_space<vmem>>, vector<16x32xf32>
    %cst_7 = arith.constant dense<0.000000e+00> : vector<24x32xf32>
    %5 = tpu.matmul %3, %4, %cst_7 {dimension_numbers = #tpu.dot_dimension_numbers<[1], [0], [0], [1], [0, 0, 1, 1], [], []>} : vector<24x16xf32>, vector<16x32xf32>, vector<24x32xf32> -> vector<24x32xf32>
    %6 = arith.addf %2, %5 : vector<24x32xf32>
    %c0_8 = arith.constant 0 : index
    %c0_9 = arith.constant 0 : index
    %7 = vector.load %arg5[%c0_8, %c0_9] : memref<1x32xf32, #tpu.memory_space<vmem>>, vector<1x32xf32>
    %8 = vector.broadcast %7 : vector<1x32xf32> to vector<24x32xf32>
    %9 = arith.addf %6, %8 : vector<24x32xf32>
    %cst_10 = arith.constant 0.000000e+00 : f32
    %10 = vector.broadcast %cst_10 : f32 to vector<24x32xf32>
    %11 = arith.maximumf %9, %10 : vector<24x32xf32>
    %c0_11 = arith.constant 0 : index
    %c0_12 = arith.constant 0 : index
    %12 = vector.load %arg6[%c0_11, %c0_12] : memref<24x32xf32, #tpu.memory_space<vmem>>, vector<24x32xf32>
    tpu.vector_store %arg6[%c0_11, %c0_12], %11 {strides = array<i32>} : memref<24x32xf32, #tpu.memory_space<vmem>>, vector<24x32xf32>,
    return
  }
  func.func @transform_0(%arg0: i32) -> (i32, i32) {
    %c0_i32 = arith.constant 0 : i32
    %c0_i32_0 = arith.constant 0 : i32
    return %arg0, %c0_i32 : i32, i32
  }
  func.func @transform_1(%arg0: i32) -> (i32, i32) {
    %c0_i32 = arith.constant 0 : i32
    %c0_i32_0 = arith.constant 0 : i32
    return %arg0, %c0_i32 : i32, i32
  }
  func.func @transform_2(%arg0: i32) -> (i32, i32) {
    %c0_i32 = arith.constant 0 : i32
    %c0_i32_0 = arith.constant 0 : i32
    %c0_i32_1 = arith.constant 0 : i32
    return %c0_i32, %c0_i32_0 : i32, i32
  }
  func.func @transform_3(%arg0: i32) -> (i32, i32) {
    %c0_i32 = arith.constant 0 : i32
    %c0_i32_0 = arith.constant 0 : i32
    %c0_i32_1 = arith.constant 0 : i32
    return %c0_i32, %c0_i32_0 : i32, i32
  }
  func.func @transform_4(%arg0: i32) -> (i32, i32) {
    %c0_i32 = arith.constant 0 : i32
    %c0_i32_0 = arith.constant 0 : i32
    %c0_i32_1 = arith.constant 0 : i32
    return %c0_i32, %c0_i32_0 : i32, i32
  }
  func.func @transform_5(%arg0: i32) -> (i32, i32) {
    %c0_i32 = arith.constant 0 : i32
    %c0_i32_0 = arith.constant 0 : i32
    return %arg0, %c0_i32 : i32, i32
  }
}

</mosaic_0001>

<bundles_post_ra>
// kernel: tpu_custom_call.1
= control target key start
LH: loop header
LB: loop body
LE: loop exit
PB: predicated region body
PF: predicated region fallthrough
CT: control target
= control target key end

     0   :  { %vm31_vm0 = vcmask 130048   ;;  %s249_s0 = inlined_call_operand.vmem [shape: f32[24,16], index: 0, kind: input, shape index: {}]   ;;  %s250_s1 = inlined_call_operand.vmem [shape: f32[24,16], index: 1, kind: input, shape index: {}]   ;;  %s251_s2 = inlined_call_operand.vmem [shape: f32[16,32], index: 2, kind: input, shape index: {}]   ;;  %s252_s3 = inlined_call_operand.vmem [shape: f32[16,32], index: 3, kind: input, shape index: {}]   ;;  %s253_s4 = inlined_call_operand.vmem [shape: f32[1,32], index: 4, kind: input, shape index: {}]   ;;  %s254_s5 = inlined_call_operand.hbm [shape: f32[24,32], index: 5, kind: output, shape index: {}]  }
   0x1   :  { %v30_v0 = vld [vmem:[%s252_s3 + $0x8] sm:$0xff]  ;;  %v29_v2 = vld [vmem:[%s252_s3] sm:$0xff] }
   0x2   :  { %v25_v1 = vld [vmem:[%s251_s2 + $0x8] sm:$0xff]  ;;  %140 = vmatpush.msra.mxu2 %v30_v0  ;;  %v24_v3 = vld [vmem:[%s251_s2] sm:$0xff]  ;;  %55 = vmatpush.msra.mxu0 %v30_v0 }
   0x3   :  { %142 = vmatpush.msra.mxu3 %v25_v1  ;;  %v27_v4 = vld [vmem:[%s250_s1 + $0x8] sm:$0xff]  ;;  %90 = vmatpush.msra.mxu1 %v25_v1  ;;  %v26_v6 = vld [vmem:[%s250_s1] sm:$0xff] }
   0x4   :  { %v22_v5 = vld [vmem:[%s249_s0 + $0x8] sm:$0xff]  ;;  %141 = vmatpush.msra.mxu2 %v29_v2  ;;  %v21_v7 = vld [vmem:[%s249_s0] sm:$0xff] }
   0x5   :  { %143 = vmatpush.msra.mxu3 %v24_v3 }
   0x6   :  { %10 = vsyncpa [#allocation3], 0  ;;  %135 = vmatmul.msk.f32.vlgmr.msra.gmra.mxu2 %vm31_vm0, %v27_v4  ;;  %138 = vmatmul.msk.f32.vlgmr.msra.gmra.mxu3 %vm31_vm0, %v22_v5  ;;  %v28_v8 = vld [vmem:[%s250_s1 + $0x10] sm:$0xff]  ;;  %v147_v12 = vld [vmem:[%s253_s4] ss:$0 sm:$0xff]  ;;  %vm112_vm1 = vcmask 261120  }
   0x7   :  { %56 = vmatpush.msra.mxu0 %v29_v2  ;;  %91 = vmatpush.msra.mxu1 %v24_v3  ;;  %v23_v9 = vld [vmem:[%s249_s0 + $0x10] sm:$0xff]  ;;  %s174_s0 = smov [#allocation2]   ;;  %s122_s4 = sshll.u32 %s254_s5, 4  ;;  %s123_s4 = int_to_ptr.hbm [resolvable:$true] %s122_s4 }
   0x8   :  { %134 = vmatmul.msk.f32.vlgmr.msra.gmra.mxu0 %vm31_vm0, %v26_v6  ;;  %137 = vmatmul.msk.f32.vlgmr.msra.gmra.mxu1 %vm31_vm0, %v21_v7  ;;  %s120_s1 = sshll.u32 %s174_s0, 4  ;;  %s175_s15 = smov 128   ;;  %s121_s1 = int_to_ptr.vmem [resolvable:$true] %s120_s1 }
   0x9   :  { %s176_s16 = smov 8  }
   0xe   :  { %136 = vmatmul.msk.f32.gmra.mxu2 %vm31_vm0, %v28_v8  ;;  %139 = vmatmul.msk.f32.gmra.mxu3 %vm31_vm0, %v23_v9 }
  0x85   :  { %v58_v10 = vpop.f32.mrf.mxu0  ;;  %v93_v11 = vpop.f32.mrf.mxu1 }
  0x86   :  { %v94_v13 = vadd.f32 %v93_v11, %v58_v10 }
  0x88   :  { %v106_v14 = vadd.f32 %v147_v12, %v94_v13 }
  0x89   :  { %v61_v15 = vpop.f32.mrf.mxu2  ;;  %v96_v16 = vpop.f32.mrf.mxu3 }
  0x8a   :  { %v97_v17 = vadd.f32 %v96_v16, %v61_v15  ;;  %v109_v18 = vmax.f32 %v106_v14, 0.0 }
  0x8c   :  { %v107_v19 = vadd.f32 %v147_v12, %v97_v17  ;;  %113 = vst.msk [vmem:[#allocation2] sm:$0xff] %vm112_vm1, %v109_v18 }
  0x8e   :  { %v110_v20 = vmax.f32 %v107_v19, 0.0 }
  0x90   :  { %114 = vst.msk [vmem:[#allocation2 + $0x8] sm:$0xff] %vm112_vm1, %v110_v20 }
  0x91   :  { %v64_v21 = vpop.f32.mrf.mxu2  ;;  %v99_v22 = vpop.f32.mrf.mxu3 }
  0x92   :  { %v100_v23 = vadd.f32 %v99_v22, %v64_v21 }
  0x94   :  { %v108_v24 = vadd.f32 %v147_v12, %v100_v23 }
  0x96   :  { %v111_v25 = vmax.f32 %v108_v24, 0.0 }
  0x98   :  { %115 = vst.msk [vmem:[#allocation2 + $0x10] sm:$0xff] %vm112_vm1, %v111_v25 }
  0x99   :  { %128 = dma.vmem_to_hbm [thread:$0]  %s121_s1, 384, %s123_s4, [#allocation3], %s175_s15, %s175_s15, %s176_s16  }
  0x9a   :  { %172 = dma.done.wait [#allocation3], 384  }
  0x9b   :  { %173 = vsyncadd [#allocation3], 4294966912 }
  0x9c   :  { %133 = vsyncpa [#allocation3], 1 }

</bundles_post_ra>
